<compile_context>
chip_gen: v5e
topology: v5e:2x2
jax: 0.10.0
libtpu: 0.0.40
codegen_flags: <defaults>
</compile_context>

<pallas_src>
import jax
import jax.numpy as jnp
from jax import lax
from jax.experimental import pallas as pl
from jax.experimental.pallas import tpu as pltpu

_LANES = 128
_SUB = 8
_EPS = 1e-08
_MAX_BLOCK_ROWS = 4096            # 4096 * 128 * 4B = 2 MiB per input block
_VMEM_LIMIT = 32 * 1024 * 1024    # 2 inputs x 2 buffers x 2 MiB + temps, all gens


def _round_up(x, m):
    return ((x + m - 1) // m) * m


def _make_kernel(rows, block_rows, num_splits, needs_mask):
    """Kernel factory closing over trace-time constants."""

    def kernel(p_ref, t_ref, acc_ref):
        s = pl.program_id(0)   # split (TensorCore) index
        j = pl.program_id(1)   # reduction step within the split

        @pl.when(j == 0)
        def _():
            acc_ref[...] = jnp.zeros_like(acc_ref)

        p = p_ref[...].astype(jnp.float32)
        t = t_ref[...].astype(jnp.float32)
        inter = p * t
        union = p + t

        if needs_mask:
            # Logical block handled this step (interleaved assignment). Rows at
            # or beyond `rows` (partial last block / clamped trailing block)
            # contribute nothing.
            blk = j * num_splits + s
            row0 = blk * block_rows
            rid = row0 + lax.broadcasted_iota(jnp.int32, (block_rows, _LANES), 0)
            valid = rid < rows
            zero = jnp.float32(0.0)
            inter = jnp.where(valid, inter, zero)
            union = jnp.where(valid, union, zero)

        # Reduce (block_rows, 128) -> (8, 128) with pure VPU adds: the reshape
        # groups whole (8,128) vreg tiles (layout-preserving), the sum over the
        # leading axis is a chain of vector adds. Cross-lane reduction is
        # deferred to the wrapper (runs once).
        acc_ref[0] = acc_ref[0] + inter.reshape(-1, _SUB, _LANES).sum(axis=0)
        acc_ref[1] = acc_ref[1] + union.reshape(-1, _SUB, _LANES).sum(axis=0)

    return kernel


def dice_loss(predict, target):
    """Pallas DiceLoss forward. predict/target: same shape (e.g. NCHW). Returns f32 scalar."""
    assert predict.shape == target.shape, "the size of predict and target must be equal."

    total = predict.size
    p = jnp.ravel(predict)
    t = jnp.ravel(target)

    # Lane-dense layout: (rows, 128). Keep native dtype (cast happens inside
    # the kernel, after the DMA). Padding (whole-array copy) only when the
    # element count is not a multiple of 128 — rare for image-shaped inputs;
    # zeros are neutral for both the product and the sum accumulators.
    if total % _LANES != 0:
        pad = _round_up(total, _LANES) - total
        p = jnp.pad(p, (0, pad))
        t = jnp.pad(t, (0, pad))
    rows = (total + _LANES - 1) // _LANES

    p2 = p.reshape(rows, _LANES)
    t2 = t.reshape(rows, _LANES)

    block_rows = min(_MAX_BLOCK_ROWS, _round_up(rows, _SUB))
    nblocks = pl.cdiv(rows, block_rows)
    num_splits = 2 if nblocks >= 2 else 1        # use both v7x TensorCores when possible
    steps = pl.cdiv(nblocks, num_splits)
    needs_mask = (num_splits * steps * block_rows) != rows

    def in_map(s, j):
        # Interleaved block assignment per split; clamp so a trailing
        # (fully-masked) iteration never requests an out-of-range block.
        return (jnp.minimum(j * num_splits + s, nblocks - 1), 0)

    kernel = _make_kernel(rows, block_rows, num_splits, needs_mask)

    out = pl.pallas_call(
        kernel,
        out_shape=jax.ShapeDtypeStruct((2 * num_splits, _SUB, _LANES), jnp.float32),
        grid_spec=pltpu.PrefetchScalarGridSpec(
            num_scalar_prefetch=0,
            grid=(num_splits, steps),
            in_specs=[
                pl.BlockSpec((block_rows, _LANES), in_map),
                pl.BlockSpec((block_rows, _LANES), in_map),
            ],
            out_specs=pl.BlockSpec((2, _SUB, _LANES), lambda s, j: (s, 0, 0)),
        ),
        compiler_params=pltpu.CompilerParams(
            dimension_semantics=("parallel", "arbitrary"),
            vmem_limit_bytes=_VMEM_LIMIT,
        ),
    )(p2, t2)

    # Tiny final reduction + score in plain JAX (combines per-split partials).
    partial = out.reshape(num_splits, 2, _SUB, _LANES)
    inter = jnp.sum(partial[:, 0])
    union = jnp.sum(partial[:, 1])
    eps = jnp.float32(_EPS)
    return jnp.float32(1.0) - jnp.float32(2.0) * (inter + eps) / (union + eps)


def _dice_loss_ref(predict, target):
    num = predict.shape[0]
    pre = predict.reshape(num, -1).astype(jnp.float32)
    tar = target.reshape(num, -1).astype(jnp.float32)
    intersection = (pre * tar).sum(-1).sum()
    union = (pre + tar).sum(-1).sum()
    return 1.0 - 2.0 * (intersection + _EPS) / (union + _EPS)


if __name__ == "__main__":
    key = jax.random.PRNGKey(0)
    kp, kt = jax.random.split(key)

    # NCHW inputs, as a BCE/Dice-style segmentation loss would receive.
    N, C, H, W = 2, 4, 16, 16
    predict = jax.random.uniform(kp, (N, C, H, W), dtype=jnp.float32)          # probabilities in [0,1)
    target = (jax.random.uniform(kt, (N, C, H, W), dtype=jnp.float32) > 0.5)   # binary mask
    target = target.astype(jnp.float32)

    score = jax.block_until_ready(dice_loss(predict, target))
    ref = jax.block_until_ready(_dice_loss_ref(predict, target))

    assert jnp.allclose(score, ref, rtol=1e-5, atol=1e-5), (score, ref)
    print("KERNEL_OK")
</pallas_src>

<mosaic_0001>
module attributes {stable_mosaic.version = 11 : i64} {
  func.func @kernel(%arg0: i32, %arg1: i32, %arg2: memref<16x128xf32, #tpu.memory_space<vmem>>, %arg3: memref<16x128xf32, #tpu.memory_space<vmem>>, %arg4: memref<2x8x128xf32, #tpu.memory_space<vmem>>) attributes {dimension_semantics = [#tpu.dimension_semantics<parallel>, #tpu.dimension_semantics<arbitrary>], iteration_bounds = array<i64: 1, 1>, scalar_prefetch = 0 : i64, scratch_operands = 0 : i64, tpu.core_type = #tpu.core_type<tc>, window_params = [{transform_indices = @transform_0, window_bounds = array<i64: 16, 128>}, {transform_indices = @transform_1, window_bounds = array<i64: 16, 128>}, {transform_indices = @transform_2, window_bounds = array<i64: 2, 8, 128>}]} {
    %c0_i32 = arith.constant 0 : i32
    %0 = arith.cmpi eq, %arg1, %c0_i32 : i32
    %1 = arith.extui %0 : i1 to i32
    %c0_i32_0 = arith.constant 0 : i32
    %2 = arith.cmpi ne, %1, %c0_i32_0 : i32
    scf.if %2 {
      %cst_16 = arith.constant 0.000000e+00 : f32
      %23 = vector.broadcast %cst_16 : f32 to vector<2x8x128xf32>
      %c0_17 = arith.constant 0 : index
      %c0_18 = arith.constant 0 : index
      %c0_19 = arith.constant 0 : index
      %24 = vector.load %arg4[%c0_17, %c0_18, %c0_19] : memref<2x8x128xf32, #tpu.memory_space<vmem>>, vector<2x8x128xf32>
      tpu.vector_store %arg4[%c0_17, %c0_18, %c0_19], %23 {strides = array<i32>} : memref<2x8x128xf32, #tpu.memory_space<vmem>>, vector<2x8x128xf32>,
    } else {
    }
    %c0 = arith.constant 0 : index
    %c0_1 = arith.constant 0 : index
    %3 = vector.load %arg2[%c0, %c0_1] : memref<16x128xf32, #tpu.memory_space<vmem>>, vector<16x128xf32>
    %c0_2 = arith.constant 0 : index
    %c0_3 = arith.constant 0 : index
    %4 = vector.load %arg3[%c0_2, %c0_3] : memref<16x128xf32, #tpu.memory_space<vmem>>, vector<16x128xf32>
    %5 = arith.mulf %3, %4 : vector<16x128xf32>
    %6 = arith.addf %3, %4 : vector<16x128xf32>
    %c0_4 = arith.constant 0 : index
    %c0_5 = arith.constant 0 : index
    %c0_6 = arith.constant 0 : index
    %7 = vector.load %arg4[%c0_4, %c0_5, %c0_6] : memref<2x8x128xf32, #tpu.memory_space<vmem>>, vector<1x8x128xf32>
    %8 = vector.shape_cast %7 : vector<1x8x128xf32> to vector<8x128xf32>
    %9 = vector.shape_cast %5 : vector<16x128xf32> to vector<2x8x128xf32>
    %cst = arith.constant dense<0.000000e+00> : vector<8x128xf32>
    %10 = vector.multi_reduction <add>, %9, %cst [0] : vector<2x8x128xf32> to vector<8x128xf32>
    %11 = arith.addf %8, %10 : vector<8x128xf32>
    %c0_7 = arith.constant 0 : index
    %c0_8 = arith.constant 0 : index
    %c0_9 = arith.constant 0 : index
    %12 = vector.load %arg4[%c0_7, %c0_8, %c0_9] : memref<2x8x128xf32, #tpu.memory_space<vmem>>, vector<1x8x128xf32>
    %13 = vector.shape_cast %12 : vector<1x8x128xf32> to vector<8x128xf32>
    %14 = vector.shape_cast %11 : vector<8x128xf32> to vector<1x8x128xf32>
    tpu.vector_store %arg4[%c0_7, %c0_8, %c0_9], %14 {strides = array<i32>} : memref<2x8x128xf32, #tpu.memory_space<vmem>>, vector<1x8x128xf32>,
    %c1 = arith.constant 1 : index
    %c0_10 = arith.constant 0 : index
    %c0_11 = arith.constant 0 : index
    %15 = vector.load %arg4[%c1, %c0_10, %c0_11] : memref<2x8x128xf32, #tpu.memory_space<vmem>>, vector<1x8x128xf32>
    %16 = vector.shape_cast %15 : vector<1x8x128xf32> to vector<8x128xf32>
    %17 = vector.shape_cast %6 : vector<16x128xf32> to vector<2x8x128xf32>
    %cst_12 = arith.constant dense<0.000000e+00> : vector<8x128xf32>
    %18 = vector.multi_reduction <add>, %17, %cst_12 [0] : vector<2x8x128xf32> to vector<8x128xf32>
    %19 = arith.addf %16, %18 : vector<8x128xf32>
    %c1_13 = arith.constant 1 : index
    %c0_14 = arith.constant 0 : index
    %c0_15 = arith.constant 0 : index
    %20 = vector.load %arg4[%c1_13, %c0_14, %c0_15] : memref<2x8x128xf32, #tpu.memory_space<vmem>>, vector<1x8x128xf32>
    %21 = vector.shape_cast %20 : vector<1x8x128xf32> to vector<8x128xf32>
    %22 = vector.shape_cast %19 : vector<8x128xf32> to vector<1x8x128xf32>
    tpu.vector_store %arg4[%c1_13, %c0_14, %c0_15], %22 {strides = array<i32>} : memref<2x8x128xf32, #tpu.memory_space<vmem>>, vector<1x8x128xf32>,
    return
  }
  func.func @transform_0(%arg0: i32, %arg1: i32) -> (i32, i32) {
    %c1_i32 = arith.constant 1 : i32
    %0 = arith.muli %arg1, %c1_i32 : i32
    %1 = arith.addi %0, %arg0 : i32
    %c0_i32 = arith.constant 0 : i32
    %2 = arith.minsi %1, %c0_i32 : i32
    %c0_i32_0 = arith.constant 0 : i32
    %c0_i32_1 = arith.constant 0 : i32
    return %2, %c0_i32_0 : i32, i32
  }
  func.func @transform_1(%arg0: i32, %arg1: i32) -> (i32, i32) {
    %c1_i32 = arith.constant 1 : i32
    %0 = arith.muli %arg1, %c1_i32 : i32
    %1 = arith.addi %0, %arg0 : i32
    %c0_i32 = arith.constant 0 : i32
    %2 = arith.minsi %1, %c0_i32 : i32
    %c0_i32_0 = arith.constant 0 : i32
    %c0_i32_1 = arith.constant 0 : i32
    return %2, %c0_i32_0 : i32, i32
  }
  func.func @transform_2(%arg0: i32, %arg1: i32) -> (i32, i32, i32) {
    %c0_i32 = arith.constant 0 : i32
    %c0_i32_0 = arith.constant 0 : i32
    %c0_i32_1 = arith.constant 0 : i32
    return %arg0, %c0_i32, %c0_i32_0 : i32, i32, i32
  }
}

</mosaic_0001>

<bundles_post_ra>
// kernel: tpu_custom_call.1
= control target key start
LH: loop header
LB: loop body
LE: loop exit
PB: predicated region body
PF: predicated region fallthrough
CT: control target
= control target key end

     0   :  { %7 = vsyncpa [#allocation3], 0  ;;  %s233_s0 = inlined_call_operand.hbm [shape: f32[16,128], index: 0, kind: input, shape index: {}]   ;;  %s234_s1 = inlined_call_operand.hbm [shape: f32[16,128], index: 1, kind: input, shape index: {}]   ;;  %s235_s2 = inlined_call_operand.hbm [shape: f32[2,8,128], index: 2, kind: output, shape index: {}]  }
   0x1   :  { %8 = vsyncpa [#allocation6], 0 }
   0x2   :  { %9 = vsyncpa [#allocation4], 0  ;;  %s20_s11 = sshll.u32 %s233_s0, 4  ;;  %s195_s12 = smov [#allocation2]   ;;  %s21_s11 = int_to_ptr.hbm [resolvable:$true] %s20_s11 }
   0x3   :  { %s22_s13 = sshll.u32 %s195_s12, 4  ;;  %s39_s16 = sshll.u32 %s234_s1, 4  ;;  %s23_s13 = int_to_ptr.vmem [resolvable:$true] %s22_s13  ;;  %s40_s16 = int_to_ptr.hbm [resolvable:$true] %s39_s16 }
   0x4   :  { %s196_s17 = smov 128   ;;  %s197_s18 = smov 8  }
   0x5   :  { %28 = dma.hbm_to_vmem [thread:$0]  %s21_s11, 256, %s23_s13, [#allocation3], %s196_s17, %s196_s17, %s197_s18  }
   0x6   :  { %s198_s19 = smov [#allocation5]  }
   0x7   :  { %s41_s20 = sshll.u32 %s198_s19, 4  ;;  %s42_s20 = int_to_ptr.vmem [resolvable:$true] %s41_s20 }
   0x8   :  { %47 = dma.hbm_to_vmem [thread:$0]  %s40_s16, 256, %s42_s20, [#allocation6], %s196_s17, %s196_s17, %s197_s18  }
   0x9   :  { %189 = dma.done.wait [#allocation3], 256  }
   0xa   :  { %190 = vsyncadd [#allocation3], 4294967040 }
   0xb   :  { %191 = dma.done.wait [#allocation6], 256  }
   0xc   :  { %192 = vsyncadd [#allocation6], 4294967040  ;;  %v70_v0 = vld [vmem:[#allocation2] sm:$0xff]  ;;  %v71_v1 = vld [vmem:[#allocation2 + $0x8] sm:$0xff]  ;;  %s199_s0 = smov [#allocation7]   ;;  %s93_s23 = sshll.u32 %s235_s2, 4  ;;  %s94_s23 = int_to_ptr.hbm [resolvable:$true] %s93_s23 }
   0xd   :  { %v72_v2 = vld [vmem:[#allocation5] sm:$0xff]  ;;  %v73_v3 = vld [vmem:[#allocation5 + $0x8] sm:$0xff]  ;;  %s91_s1 = sshll.u32 %s199_s0, 4  ;;  %s92_s1 = int_to_ptr.vmem [resolvable:$true] %s91_s1 }
   0xe   :  { %v74_v4 = vmul.f32 %v72_v2, %v70_v0  ;;  %v76_v5 = vadd.f32 %v72_v2, %v70_v0  ;;  %v75_v6 = vmul.f32 %v73_v3, %v71_v1  ;;  %v77_v7 = vadd.f32 %v73_v3, %v71_v1 }
  0x10   :  { %v79_v8 = vadd.f32 %v75_v6, %v74_v4  ;;  %v84_v9 = vadd.f32 %v77_v7, %v76_v5 }
  0x12   :  { %81 = vst [vmem:[#allocation7] sm:$0xff] %v79_v8 }
  0x13   :  { %86 = vst [vmem:[#allocation7 + $0x8] sm:$0xff] %v84_v9 }
  0x14   :  { %99 = dma.vmem_to_hbm [thread:$0]  %s92_s1, 256, %s94_s23, [#allocation4], %s196_s17, %s196_s17, %s197_s18  }
  0x15   :  { %193 = dma.done.wait [#allocation4], 256  }
  0x16   :  { %194 = vsyncadd [#allocation4], 4294967040 }
  0x17   :  { %104 = vsyncpa [#allocation3], 1 }
  0x18   :  { %105 = vsyncpa [#allocation6], 1 }
  0x19   :  { %106 = vsyncpa [#allocation4], 1 }

</bundles_post_ra>
